<compile_context>
chip_gen: v6e
topology: v6e:2x2x1
jax: 0.10.0
libtpu: 0.0.40
codegen_flags: <defaults>
</compile_context>

<pallas_src>
import functools

import jax
import jax.numpy as jnp
from jax.experimental import pallas as pl
from jax.experimental.pallas import tpu as pltpu


def _layernorm_kernel(x_ref, a_ref, b_ref, o_ref, *, eps, hidden):
    # x_ref: (row_tile, hidden); a_ref/b_ref: (1, hidden)
    x = x_ref[...].astype(jnp.float32)
    a = a_ref[...].astype(jnp.float32)
    b = b_ref[...].astype(jnp.float32)

    mean = jnp.mean(x, axis=-1, keepdims=True)
    diff = x - mean
    # torch.var default is unbiased (divides by N-1); guard hidden == 1.
    denom = max(hidden - 1, 1)
    var = jnp.sum(diff * diff, axis=-1, keepdims=True) * (1.0 / denom)
    inv_std = jax.lax.rsqrt(var + eps)
    o_ref[...] = (diff * (a * inv_std) + b).astype(o_ref.dtype)


def _choose_row_tile(rows, hidden, dtype):
    """Largest sublane-aligned row tile fitting a conservative VMEM budget."""
    itemsize = jnp.dtype(dtype).itemsize
    if itemsize >= 4:
        sublane = 8     # f32: 8 rows per vreg sublane group
    elif itemsize == 2:
        sublane = 16    # bf16 packs 16 rows per vreg
    else:
        sublane = 32

    # Budget for the pipelined tiles: 2x double-buffered x + 2x out in the DMA
    # dtype, plus ~2 f32 temporaries per row of compute. Keep well under the
    # 48 MiB vmem_limit we request (and under v7x's 64 MiB physical VMEM).
    tile_budget_bytes = 24 * 1024 * 1024
    bytes_per_row = hidden * (4 * itemsize + 8)
    tile = tile_budget_bytes // max(bytes_per_row, 1)
    tile = max(sublane, min(int(tile), 1024))
    tile = (tile // sublane) * sublane

    # No point in a tile larger than the (sublane-rounded) row count.
    rows_rounded = ((rows + sublane - 1) // sublane) * sublane
    tile = min(tile, rows_rounded)
    return max(tile, sublane)


def layernorm_pallas(x, a, b, eps=1e-5, row_tile=None):
    """x: (..., hidden); a, b: (hidden,). Normalizes over the last dim."""
    orig_shape = x.shape
    hidden = orig_shape[-1]
    rows = 1
    for d in orig_shape[:-1]:
        rows *= d

    x2 = x.reshape(rows, hidden)
    a2 = a.reshape(1, hidden)
    b2 = b.reshape(1, hidden)

    if row_tile is None:
        row_tile = _choose_row_tile(rows, hidden, x.dtype)

    grid = (pl.cdiv(rows, row_tile),)  # partial last block handled by Pallas

    kernel = functools.partial(_layernorm_kernel, eps=eps, hidden=hidden)

    out = pl.pallas_call(
        kernel,
        out_shape=jax.ShapeDtypeStruct((rows, hidden), x.dtype),
        grid_spec=pl.GridSpec(
            grid=grid,
            in_specs=[
                pl.BlockSpec((row_tile, hidden), lambda i: (i, 0)),
                pl.BlockSpec((1, hidden), lambda i: (0, 0)),
                pl.BlockSpec((1, hidden), lambda i: (0, 0)),
            ],
            out_specs=pl.BlockSpec((row_tile, hidden), lambda i: (i, 0)),
        ),
        compiler_params=pltpu.CompilerParams(
            # "parallel" lets v7x shard the row loop across its two TCs;
            # no-op on single-TC v5e/v6e.
            dimension_semantics=("parallel",),
            # Raise scoped VMEM so large tiles compile; 48 MiB leaves headroom
            # on v7x (64 MiB physical) and is well under v5e/v6e (128 MiB).
            vmem_limit_bytes=48 * 1024 * 1024,
        ),
    )(x2, a2, b2)

    return out.reshape(orig_shape)


def layernorm_ref(x, a, b, eps=1e-5):
    xf = x.astype(jnp.float32)
    mean = jnp.mean(xf, axis=-1, keepdims=True)
    var = jnp.var(xf, axis=-1, keepdims=True, ddof=1)  # unbiased, like torch.var
    return ((xf - mean) * a / jnp.sqrt(var + eps) + b).astype(x.dtype)


if __name__ == "__main__":
    key = jax.random.PRNGKey(0)
    batch, seq, hidden = 2, 8, 32
    x = jax.random.normal(key, (batch, seq, hidden), dtype=jnp.float32)

    # Parameters initialized as in the module's __init__: a = ones, b = zeros.
    a = jnp.ones((hidden,), dtype=jnp.float32)
    b = jnp.zeros((hidden,), dtype=jnp.float32)

    out = layernorm_pallas(x, a, b, eps=1e-5)
    out = jax.block_until_ready(out)

    ref = layernorm_ref(x, a, b, eps=1e-5)
    assert out.shape == x.shape
    assert jnp.allclose(out, ref, atol=1e-5, rtol=1e-5), "mismatch vs reference"

    print("KERNEL_OK")
</pallas_src>

<mosaic_0001>
module attributes {stable_mosaic.version = 11 : i64} {
  func.func @_layernorm_kernel(%arg0: i32, %arg1: memref<16x32xf32, #tpu.memory_space<vmem>>, %arg2: memref<1x32xf32, #tpu.memory_space<vmem>>, %arg3: memref<1x32xf32, #tpu.memory_space<vmem>>, %arg4: memref<16x32xf32, #tpu.memory_space<vmem>>) attributes {dimension_semantics = [#tpu.dimension_semantics<parallel>], iteration_bounds = array<i64: 1>, scalar_prefetch = 0 : i64, scratch_operands = 0 : i64, tpu.core_type = #tpu.core_type<tc>, window_params = [{transform_indices = @transform_0, window_bounds = array<i64: 16, 32>}, {pipeline_mode = #tpu.pipeline_mode<synchronous>, transform_indices = @transform_1, window_bounds = array<i64: 1, 32>}, {pipeline_mode = #tpu.pipeline_mode<synchronous>, transform_indices = @transform_2, window_bounds = array<i64: 1, 32>}, {transform_indices = @transform_3, window_bounds = array<i64: 16, 32>}]} {
    %c0 = arith.constant 0 : index
    %c0_0 = arith.constant 0 : index
    %0 = vector.load %arg1[%c0, %c0_0] : memref<16x32xf32, #tpu.memory_space<vmem>>, vector<16x32xf32>
    %c0_1 = arith.constant 0 : index
    %c0_2 = arith.constant 0 : index
    %1 = vector.load %arg2[%c0_1, %c0_2] : memref<1x32xf32, #tpu.memory_space<vmem>>, vector<1x32xf32>
    %c0_3 = arith.constant 0 : index
    %c0_4 = arith.constant 0 : index
    %2 = vector.load %arg3[%c0_3, %c0_4] : memref<1x32xf32, #tpu.memory_space<vmem>>, vector<1x32xf32>
    %cst = arith.constant dense<0.000000e+00> : vector<16xf32>
    %3 = vector.multi_reduction <add>, %0, %cst [1] : vector<16x32xf32> to vector<16xf32>
    %4 = vector.shape_cast %3 : vector<16xf32> to vector<16x1xf32>
    %cst_5 = arith.constant 3.200000e+01 : f32
    %5 = vector.broadcast %cst_5 : f32 to vector<16x1xf32>
    %6 = arith.divf %4, %5 : vector<16x1xf32>
    %7 = vector.broadcast %6 : vector<16x1xf32> to vector<16x32xf32>
    %8 = arith.subf %0, %7 : vector<16x32xf32>
    %9 = arith.mulf %8, %8 : vector<16x32xf32>
    %cst_6 = arith.constant dense<0.000000e+00> : vector<16xf32>
    %10 = vector.multi_reduction <add>, %9, %cst_6 [1] : vector<16x32xf32> to vector<16xf32>
    %11 = vector.shape_cast %10 : vector<16xf32> to vector<16x1xf32>
    %cst_7 = arith.constant 0.0322580636 : f32
    %12 = vector.broadcast %cst_7 : f32 to vector<16x1xf32>
    %13 = arith.mulf %11, %12 : vector<16x1xf32>
    %cst_8 = arith.constant 9.99999974E-6 : f32
    %14 = vector.broadcast %cst_8 : f32 to vector<16x1xf32>
    %15 = arith.addf %13, %14 : vector<16x1xf32>
    %16 = math.rsqrt %15 : vector<16x1xf32>
    %17 = vector.broadcast %1 : vector<1x32xf32> to vector<16x32xf32>
    %18 = vector.broadcast %16 : vector<16x1xf32> to vector<16x32xf32>
    %19 = arith.mulf %17, %18 : vector<16x32xf32>
    %20 = arith.mulf %8, %19 : vector<16x32xf32>
    %21 = vector.broadcast %2 : vector<1x32xf32> to vector<16x32xf32>
    %22 = arith.addf %20, %21 : vector<16x32xf32>
    %c0_9 = arith.constant 0 : index
    %c0_10 = arith.constant 0 : index
    %23 = vector.load %arg4[%c0_9, %c0_10] : memref<16x32xf32, #tpu.memory_space<vmem>>, vector<16x32xf32>
    tpu.vector_store %arg4[%c0_9, %c0_10], %22 {strides = array<i32>} : memref<16x32xf32, #tpu.memory_space<vmem>>, vector<16x32xf32>,
    return
  }
  func.func @transform_0(%arg0: i32) -> (i32, i32) {
    %c0_i32 = arith.constant 0 : i32
    %c0_i32_0 = arith.constant 0 : i32
    return %arg0, %c0_i32 : i32, i32
  }
  func.func @transform_1(%arg0: i32) -> (i32, i32) {
    %c0_i32 = arith.constant 0 : i32
    %c0_i32_0 = arith.constant 0 : i32
    %c0_i32_1 = arith.constant 0 : i32
    return %c0_i32, %c0_i32_0 : i32, i32
  }
  func.func @transform_2(%arg0: i32) -> (i32, i32) {
    %c0_i32 = arith.constant 0 : i32
    %c0_i32_0 = arith.constant 0 : i32
    %c0_i32_1 = arith.constant 0 : i32
    return %c0_i32, %c0_i32_0 : i32, i32
  }
  func.func @transform_3(%arg0: i32) -> (i32, i32) {
    %c0_i32 = arith.constant 0 : i32
    %c0_i32_0 = arith.constant 0 : i32
    return %arg0, %c0_i32 : i32, i32
  }
}

</mosaic_0001>

<bundles_post_ra>
// kernel: tpu_custom_call.1
= control target key start
LH: loop header
LB: loop body
LE: loop exit
PB: predicated region body
PF: predicated region fallthrough
CT: control target
= control target key end

     0   :  { %8 = vsyncpa [#allocation3], 0  ;;  %s198_s0 = inlined_call_operand.hbm [shape: f32[16,32], index: 0, kind: input, shape index: {}]   ;;  %s199_s1 = inlined_call_operand.vmem [shape: f32[1,32], index: 1, kind: input, shape index: {}]   ;;  %s200_s2 = inlined_call_operand.vmem [shape: f32[1,32], index: 2, kind: input, shape index: {}]   ;;  %s201_s3 = inlined_call_operand.hbm [shape: f32[16,32], index: 3, kind: output, shape index: {}]  }
   0x1   :  { %9 = vsyncpa [#allocation4], 0  ;;  %s150_s12 = smov [#allocation2]  }
   0x2   :  { %s15_s13 = sshll.u32 %s150_s12, 4  ;;  %s16_s13 = int_to_ptr.vmem [resolvable:$true] %s15_s13 }
   0x3   :  { %s114_s14 = scalar_lea.vmem %s16_s13, 256  ;;  %p119_p1 = scmp.lt.s32.totalorder %s16_s13, %s16_s13 }
   0x4   :  { %p115_p0 = scmp.ne.s32.totalorder %s16_s13, %s114_s14  ;;  %p120_p2 = scmp.lt.s32.totalorder %s114_s14, %s114_s14 }
   0x6   :  { %p121_p3 = por %p120_p2, %p119_p1 }
   0x8   :  { %p122_p4 = pnand %p121_p3, %p115_p0 }
   0xa   :  { %125 = shalt.err (!%p122_p4)
}
   0xb   :  { %s151_s15 = smov 128   ;;  %s152_s16 = smov 8  }
   0xc   :  { %21 = dma.hbm_to_vmem [thread:$0]  %s198_s0, 256, %s16_s13, [#allocation3], %s151_s15, %s151_s15, %s152_s16  }
   0xd   :  { %146 = dma.done.wait [#allocation3], 256  }
   0xe   :  { %147 = vsyncadd [#allocation3], 4294967040  ;;  %vm33_vm0 = vcmask 261120   ;;  %v29_v0 = vld [vmem:[#allocation2] sm:$0xff]  ;;  %v30_v1 = vld [vmem:[#allocation2 + $0x8] sm:$0xff]  ;;  %s153_s22 = smov [#allocation5]  }
   0xf   :  { %v34_v2 = vsel %vm33_vm0, %v29_v0, 0.0  ;;  %v37_v3 = vsel %vm33_vm0, %v30_v1, 0.0  ;;  %v96_v20 = vld [vmem:[%s199_s1] ss:$0 sm:$0xff]  ;;  %s84_s23 = sshll.u32 %s153_s22, 4  ;;  %s85_s23 = int_to_ptr.vmem [resolvable:$true] %s84_s23 }
  0x10   :  { %35 = vadd.xlane.f32.xlu0 %v34_v2  ;;  %v97_v23 = vld [vmem:[%s200_s2] ss:$0 sm:$0xff]  ;;  %s126_s1 = scalar_lea.vmem %s85_s23, 256  ;;  %p131_p6 = scmp.lt.s32.totalorder %s85_s23, %s85_s23 }
  0x11   :  { %p127_p5 = scmp.ne.s32.totalorder %s85_s23, %s126_s1  ;;  %p132_p7 = scmp.lt.s32.totalorder %s126_s1, %s126_s1 }
  0x13   :  { %p133_p8 = por %p132_p7, %p131_p6 }
  0x14   :  { %38 = vadd.xlane.f32.xlu0 %v37_v3 }
  0x15   :  { %p134_p9 = pnand %p133_p8, %p127_p5 }
  0x99   :  { %v36_v4 = vpop.xlane.xlu0 %35 }
  0x9a   :  { %v41_v5 = vmul.f32 0.03125, %v36_v4 }
  0x9c   :  { %v43_v6 = vsub.f32 %v29_v0, %v41_v5 }
  0x9d   :  { %v39_v7 = vpop.xlane.xlu0 %38 }
  0x9e   :  { %v42_v8 = vmul.f32 0.03125, %v39_v7  ;;  %v45_v9 = vmul.f32 %v43_v6, %v43_v6 }
  0xa0   :  { %v44_v10 = vsub.f32 %v30_v1, %v42_v8  ;;  %v47_v11 = vsel %vm33_vm0, %v45_v9, 0.0 }
  0xa1   :  { %48 = vadd.xlane.f32.xlu1 %v47_v11 }
  0xa2   :  { %v46_v12 = vmul.f32 %v44_v10, %v44_v10 }
  0xa4   :  { %v50_v13 = vsel %vm33_vm0, %v46_v12, 0.0 }
  0xa5   :  { %51 = vadd.xlane.f32.xlu1 %v50_v13 }
 0x12a   :  { %v49_v14 = vpop.xlane.xlu1 %48 }
 0x12b   :  { %v53_v15 = vmul.f32 0.032258064, %v49_v14 }
 0x12d   :  { %v55_v16 = vadd.f32 1e-05, %v53_v15 }
 0x12e   :  { %v52_v17 = vpop.xlane.xlu1 %51 }
 0x12f   :  { %102 = vrsqrt.f32 %v55_v16  ;;  %v54_v18 = vmul.f32 0.032258064, %v52_v17 }
 0x131   :  { %v56_v19 = vadd.f32 1e-05, %v54_v18 }
 0x133   :  { %104 = vrsqrt.f32 %v56_v19 }
 0x13c   :  { %v103_v21 = vpop.eup %102 }
 0x13d   :  { %v65_v22 = vmul.f32 %v103_v21, %v96_v20 }
 0x13f   :  { %v67_v24 = vmul.f32 %v65_v22, %v43_v6 }
 0x140   :  { %v105_v25 = vpop.eup %104 }
 0x141   :  { %v66_v26 = vmul.f32 %v105_v25, %v96_v20  ;;  %v75_v27 = vadd.f32 %v97_v23, %v67_v24 }
 0x143   :  { %v68_v28 = vmul.f32 %v66_v26, %v44_v10  ;;  %77 = vst.msk [vmem:[#allocation5] sm:$0xff] %vm33_vm0, %v75_v27 }
 0x145   :  { %v76_v29 = vadd.f32 %v97_v23, %v68_v28 }
 0x147   :  { %78 = vst.msk [vmem:[#allocation5 + $0x8] sm:$0xff] %vm33_vm0, %v76_v29 }
 0x148   :  { %137 = shalt.err (!%p134_p9)
}
 0x149   :  { %90 = dma.vmem_to_hbm [thread:$0]  %s85_s23, 256, %s201_s3, [#allocation4], %s151_s15, %s151_s15, %s152_s16  }
 0x14a   :  { %148 = dma.done.wait [#allocation4], 256  }
 0x14b   :  { %149 = vsyncadd [#allocation4], 4294967040 }
 0x14c   :  { %94 = vsyncpa [#allocation3], 1 }
 0x14d   :  { %95 = vsyncpa [#allocation4], 1 }

</bundles_post_ra>
